<compile_context>
chip_gen: v6e
topology: v6e:2x2x1
jax: 0.10.0
libtpu: 0.0.40
codegen_flags: <defaults>
</compile_context>

<pallas_src>
import functools

import jax
import jax.numpy as jnp
from jax import lax
from jax.experimental import pallas as pl
from jax.experimental.pallas import tpu as pltpu


def tcn_kernel(x_ref, w_ref, scale_ref, shift_ref, o_ref, *, v, fast_math):
    # x_ref:     [nb, in_c, t*v]   (flattened NCHW block, nb samples)
    # w_ref:     [3, out_c, in_c]  (temporal tap k -> w_ref[k])
    # scale_ref: [out_c, 1]        (BN gamma / sqrt(var + eps))
    # shift_ref: [out_c, 1]        (BN beta - mean * scale)
    # o_ref:     [nb, out_c, t*v]
    nb, cin, L = x_ref.shape
    cout = o_ref.shape[1]
    mxu_dtype = jnp.bfloat16 if fast_math else jnp.float32

    x = x_ref[...]                                         # [nb, cin, L]

    # Temporal padding (1,0) handled in-kernel: zero-edge lane shifts of the
    # flattened (t*v) axis (shift by +-v lanes == shift by +-1 time step).
    zeros_v = jnp.zeros((nb, cin, v), x.dtype)
    x_prev = jnp.concatenate([zeros_v, x[:, :, :L - v]], axis=2)  # tau - 1
    x_next = jnp.concatenate([x[:, :, v:], zeros_v], axis=2)      # tau + 1
    taps = (x_prev, x, x_next)                             # conv taps k = 0, 1, 2

    w = w_ref[...].astype(mxu_dtype)                       # [3, cout, cin]

    # Hoist the BN broadcasts out of the sample loop (no CSE for broadcasts).
    scale_b = jnp.broadcast_to(scale_ref[...], (cout, L))  # [cout, L]
    shift_b = jnp.broadcast_to(shift_ref[...], (cout, L))  # [cout, L]

    for b in range(nb):                                    # static unroll (nb <= 8)
        acc = jnp.zeros((cout, L), jnp.float32)
        for k in range(3):                                 # 3 temporal taps on the MXU
            acc += jnp.dot(w[k], taps[k][b].astype(mxu_dtype),
                           preferred_element_type=jnp.float32)

        # Mish: y * tanh(softplus(y)), PyTorch softplus threshold 20,
        # rewritten with ONE exp:  tanh(log1p(e)) = ((1+e)^2-1)/((1+e)^2+1).
        e = jnp.exp(jnp.minimum(acc, 20.0))
        u = (1.0 + e) * (1.0 + e)
        if fast_math:
            tanh_sp = (u - 1.0) * pl.reciprocal(u + 1.0, approx=True)
        else:
            tanh_sp = (u - 1.0) / (u + 1.0)
        y = jnp.where(acc > 20.0, acc, acc * tanh_sp)

        # Folded eval-mode BatchNorm2d (per out-channel row).
        y = y * scale_b + shift_b
        o_ref[b] = y.astype(o_ref.dtype)


def tcn_forward(x_nchw, w_oihw, gamma, beta, run_mean, run_var, eps=1e-5,
                *, fast_math=True, block_n=None):
    """x_nchw: [n, in_c, t, v] -> [n, out_c, t, v] (eval-mode TCN.forward)."""
    n, cin, t, v = x_nchw.shape
    cout = w_oihw.shape[0]
    L = t * v

    # Dropout (eval) == identity.  Contiguous reshape only in the wrapper.
    x2 = x_nchw.reshape(n, cin, L)

    # Conv2d weight [out_c, in_c, 3, 1] -> [3, out_c, in_c] (tiny tensor).
    w = jnp.transpose(w_oihw[..., 0], (2, 0, 1))

    # Fold eval-mode BatchNorm into per-channel scale/shift.
    scale = gamma / jnp.sqrt(run_var + eps)
    shift = beta - run_mean * scale
    scale = scale.reshape(cout, 1).astype(jnp.float32)
    shift = shift.reshape(cout, 1).astype(jnp.float32)

    # Samples per grid step: amortize per-step overhead, cap the static
    # unroll, and keep >= 2 grid steps when n allows (feeds both megacore TCs).
    if block_n is None:
        nb = max(1, min(n, 1024 // max(L, 1), 8))
        if n >= 2 and pl.cdiv(n, nb) < 2:
            nb = max(1, pl.cdiv(n, 2))
    else:
        nb = block_n
    n_pad = pl.cdiv(n, nb) * nb
    if n_pad != n:
        x2 = jnp.pad(x2, ((0, n_pad - n), (0, 0), (0, 0)))

    kernel = functools.partial(tcn_kernel, v=v, fast_math=fast_math)
    out = pl.pallas_call(
        kernel,
        out_shape=jax.ShapeDtypeStruct((n_pad, cout, L), x_nchw.dtype),
        grid=(n_pad // nb,),
        in_specs=[
            pl.BlockSpec((nb, cin, L), lambda i: (i, 0, 0)),
            pl.BlockSpec((3, cout, cin), lambda i: (0, 0, 0)),
            pl.BlockSpec((cout, 1), lambda i: (0, 0)),
            pl.BlockSpec((cout, 1), lambda i: (0, 0)),
        ],
        out_specs=pl.BlockSpec((nb, cout, L), lambda i: (i, 0, 0)),
        compiler_params=pltpu.CompilerParams(
            dimension_semantics=("parallel",)),
    )(x2, w, scale, shift)

    return out[:n].reshape(n, cout, t, v)                  # NCHW, no transpose


def tcn_reference(x_nchw, w_oihw, gamma, beta, run_mean, run_var, eps=1e-5):
    """Pure-JAX reference matching PyTorch eval-mode TCN.forward."""
    y = lax.conv_general_dilated(
        x_nchw, w_oihw,
        window_strides=(1, 1), padding=((1, 1), (0, 0)),
        dimension_numbers=("NCHW", "OIHW", "NCHW"))
    sp = jnp.where(y > 20.0, y, jnp.log1p(jnp.exp(jnp.minimum(y, 20.0))))
    y = y * jnp.tanh(sp)                                   # Mish
    c = y.shape[1]
    g = gamma.reshape(1, c, 1, 1)
    b = beta.reshape(1, c, 1, 1)
    m = run_mean.reshape(1, c, 1, 1)
    var = run_var.reshape(1, c, 1, 1)
    return g * (y - m) / jnp.sqrt(var + eps) + b           # BatchNorm2d (eval)


if __name__ == "__main__":
    # Small shapes consistent with forward: x [n, in_c, t, v]; t*v = 128.
    n, in_c, out_c, t, v = 2, 4, 8, 8, 16

    key = jax.random.PRNGKey(0)
    kx, kw, kg, kb, km, kv = jax.random.split(key, 6)

    x = jax.random.normal(kx, (n, in_c, t, v), dtype=jnp.float32)
    w = jax.random.normal(kw, (out_c, in_c, 3, 1), dtype=jnp.float32) * 0.2
    gamma = 1.0 + 0.1 * jax.random.normal(kg, (out_c,), dtype=jnp.float32)
    beta = 0.1 * jax.random.normal(kb, (out_c,), dtype=jnp.float32)
    run_mean = 0.1 * jax.random.normal(km, (out_c,), dtype=jnp.float32)
    run_var = jnp.abs(jax.random.normal(kv, (out_c,), dtype=jnp.float32)) + 0.5

    ref = tcn_reference(x, w, gamma, beta, run_mean, run_var)

    # Precise path (f32 MXU, exact reciprocal): tight numerical check.
    out_precise = jax.block_until_ready(
        tcn_forward(x, w, gamma, beta, run_mean, run_var, fast_math=False))
    assert out_precise.shape == (n, out_c, t, v), out_precise.shape
    assert jnp.allclose(out_precise, ref, rtol=1e-4, atol=1e-4), (
        float(jnp.max(jnp.abs(out_precise - ref))))

    # Fast path (bf16 MXU feed + approx reciprocal Mish): relaxed tolerance.
    out_fast = jax.block_until_ready(
        tcn_forward(x, w, gamma, beta, run_mean, run_var, fast_math=True))
    assert out_fast.shape == (n, out_c, t, v), out_fast.shape
    assert jnp.allclose(out_fast, ref, rtol=5e-2, atol=5e-2), (
        float(jnp.max(jnp.abs(out_fast - ref))))

    # TODO(synk): training-mode Dropout / batch-statistics BatchNorm are
    # stochastic / batch-dependent; eval-mode semantics are implemented here.
    print("KERNEL_OK")
</pallas_src>

<mosaic_0001>
module attributes {stable_mosaic.version = 11 : i64} {
  func.func @tcn_kernel(%arg0: i32, %arg1: memref<1x4x128xf32, #tpu.memory_space<vmem>>, %arg2: memref<3x8x4xf32, #tpu.memory_space<vmem>>, %arg3: memref<8x1xf32, #tpu.memory_space<vmem>>, %arg4: memref<8x1xf32, #tpu.memory_space<vmem>>, %arg5: memref<1x8x128xf32, #tpu.memory_space<vmem>>) attributes {dimension_semantics = [#tpu.dimension_semantics<parallel>], iteration_bounds = array<i64: 2>, scalar_prefetch = 0 : i64, scratch_operands = 0 : i64, tpu.core_type = #tpu.core_type<tc>, window_params = [{transform_indices = @transform_0, window_bounds = array<i64: 1, 4, 128>}, {pipeline_mode = #tpu.pipeline_mode<synchronous>, transform_indices = @transform_1, window_bounds = array<i64: 3, 8, 4>}, {pipeline_mode = #tpu.pipeline_mode<synchronous>, transform_indices = @transform_2, window_bounds = array<i64: 8, 1>}, {pipeline_mode = #tpu.pipeline_mode<synchronous>, transform_indices = @transform_3, window_bounds = array<i64: 8, 1>}, {transform_indices = @transform_4, window_bounds = array<i64: 1, 8, 128>}]} {
    %c0 = arith.constant 0 : index
    %c0_0 = arith.constant 0 : index
    %c0_1 = arith.constant 0 : index
    %0 = vector.load %arg1[%c0, %c0_0, %c0_1] : memref<1x4x128xf32, #tpu.memory_space<vmem>>, vector<1x4x128xf32>
    %cst = arith.constant 0.000000e+00 : f32
    %1 = vector.broadcast %cst : f32 to vector<1x4x16xf32>
    %2 = vector.extract_strided_slice %0 {offsets = [0, 0, 0], sizes = [1, 4, 112], strides = [1, 1, 1]} : vector<1x4x128xf32> to vector<1x4x112xf32>
    %3 = tpu.concatenate %1, %2 in 2 : vector<1x4x16xf32>, vector<1x4x112xf32> -> vector<1x4x128xf32>
    %4 = vector.extract_strided_slice %0 {offsets = [0, 0, 16], sizes = [1, 4, 112], strides = [1, 1, 1]} : vector<1x4x128xf32> to vector<1x4x112xf32>
    %5 = tpu.concatenate %4, %1 in 2 : vector<1x4x112xf32>, vector<1x4x16xf32> -> vector<1x4x128xf32>
    %c0_2 = arith.constant 0 : index
    %c0_3 = arith.constant 0 : index
    %c0_4 = arith.constant 0 : index
    %6 = vector.load %arg2[%c0_2, %c0_3, %c0_4] : memref<3x8x4xf32, #tpu.memory_space<vmem>>, vector<3x8x4xf32>
    %c0_5 = arith.constant 0 : index
    %c0_6 = arith.constant 0 : index
    %7 = vector.load %arg3[%c0_5, %c0_6] : memref<8x1xf32, #tpu.memory_space<vmem>>, vector<8x1xf32>
    %8 = vector.shape_cast %7 : vector<8x1xf32> to vector<8x1xf32>
    %9 = vector.broadcast %8 : vector<8x1xf32> to vector<8x128xf32>
    %c0_7 = arith.constant 0 : index
    %c0_8 = arith.constant 0 : index
    %10 = vector.load %arg4[%c0_7, %c0_8] : memref<8x1xf32, #tpu.memory_space<vmem>>, vector<8x1xf32>
    %11 = vector.shape_cast %10 : vector<8x1xf32> to vector<8x1xf32>
    %12 = vector.broadcast %11 : vector<8x1xf32> to vector<8x128xf32>
    %cst_9 = arith.constant 0.000000e+00 : f32
    %13 = vector.broadcast %cst_9 : f32 to vector<8x128xf32>
    %14 = vector.extract_strided_slice %6 {offsets = [0, 0, 0], sizes = [1, 8, 4], strides = [1, 1, 1]} : vector<3x8x4xf32> to vector<1x8x4xf32>
    %15 = vector.shape_cast %14 : vector<1x8x4xf32> to vector<8x4xf32>
    %16 = vector.shape_cast %3 : vector<1x4x128xf32> to vector<4x128xf32>
    %cst_10 = arith.constant dense<0.000000e+00> : vector<8x128xf32>
    %17 = tpu.matmul %15, %16, %cst_10 {dimension_numbers = #tpu.dot_dimension_numbers<[1], [0], [0], [1], [0, 0, 1, 1], [], []>} : vector<8x4xf32>, vector<4x128xf32>, vector<8x128xf32> -> vector<8x128xf32>
    %18 = arith.addf %13, %17 : vector<8x128xf32>
    %19 = vector.extract_strided_slice %6 {offsets = [1, 0, 0], sizes = [1, 8, 4], strides = [1, 1, 1]} : vector<3x8x4xf32> to vector<1x8x4xf32>
    %20 = vector.shape_cast %19 : vector<1x8x4xf32> to vector<8x4xf32>
    %21 = vector.shape_cast %0 : vector<1x4x128xf32> to vector<4x128xf32>
    %cst_11 = arith.constant dense<0.000000e+00> : vector<8x128xf32>
    %22 = tpu.matmul %20, %21, %cst_11 {dimension_numbers = #tpu.dot_dimension_numbers<[1], [0], [0], [1], [0, 0, 1, 1], [], []>} : vector<8x4xf32>, vector<4x128xf32>, vector<8x128xf32> -> vector<8x128xf32>
    %23 = arith.addf %18, %22 : vector<8x128xf32>
    %24 = vector.extract_strided_slice %6 {offsets = [2, 0, 0], sizes = [1, 8, 4], strides = [1, 1, 1]} : vector<3x8x4xf32> to vector<1x8x4xf32>
    %25 = vector.shape_cast %24 : vector<1x8x4xf32> to vector<8x4xf32>
    %26 = vector.shape_cast %5 : vector<1x4x128xf32> to vector<4x128xf32>
    %cst_12 = arith.constant dense<0.000000e+00> : vector<8x128xf32>
    %27 = tpu.matmul %25, %26, %cst_12 {dimension_numbers = #tpu.dot_dimension_numbers<[1], [0], [0], [1], [0, 0, 1, 1], [], []>} : vector<8x4xf32>, vector<4x128xf32>, vector<8x128xf32> -> vector<8x128xf32>
    %28 = arith.addf %23, %27 : vector<8x128xf32>
    %cst_13 = arith.constant 2.000000e+01 : f32
    %29 = vector.broadcast %cst_13 : f32 to vector<8x128xf32>
    %30 = arith.minimumf %28, %29 : vector<8x128xf32>
    %31 = math.exp %30 : vector<8x128xf32>
    %cst_14 = arith.constant 1.000000e+00 : f32
    %32 = vector.broadcast %cst_14 : f32 to vector<8x128xf32>
    %33 = arith.addf %32, %31 : vector<8x128xf32>
    %cst_15 = arith.constant 1.000000e+00 : f32
    %34 = vector.broadcast %cst_15 : f32 to vector<8x128xf32>
    %35 = arith.addf %34, %31 : vector<8x128xf32>
    %36 = arith.mulf %33, %35 : vector<8x128xf32>
    %cst_16 = arith.constant 1.000000e+00 : f32
    %37 = vector.broadcast %cst_16 : f32 to vector<8x128xf32>
    %38 = arith.subf %36, %37 : vector<8x128xf32>
    %cst_17 = arith.constant 1.000000e+00 : f32
    %39 = vector.broadcast %cst_17 : f32 to vector<8x128xf32>
    %40 = arith.addf %36, %39 : vector<8x128xf32>
    %41 = arith.divf %38, %40 : vector<8x128xf32>
    %cst_18 = arith.constant 2.000000e+01 : f32
    %42 = vector.broadcast %cst_18 : f32 to vector<8x128xf32>
    %43 = arith.cmpf ogt, %28, %42 : vector<8x128xf32>
    %44 = arith.mulf %28, %41 : vector<8x128xf32>
    %45 = arith.select %43, %28, %44 : vector<8x128xi1>, vector<8x128xf32>
    %46 = arith.mulf %45, %9 : vector<8x128xf32>
    %47 = arith.addf %46, %12 : vector<8x128xf32>
    %c0_19 = arith.constant 0 : index
    %c0_20 = arith.constant 0 : index
    %c0_21 = arith.constant 0 : index
    %48 = vector.load %arg5[%c0_19, %c0_20, %c0_21] : memref<1x8x128xf32, #tpu.memory_space<vmem>>, vector<1x8x128xf32>
    %49 = vector.shape_cast %48 : vector<1x8x128xf32> to vector<8x128xf32>
    %50 = vector.shape_cast %47 : vector<8x128xf32> to vector<1x8x128xf32>
    tpu.vector_store %arg5[%c0_19, %c0_20, %c0_21], %50 {strides = array<i32>} : memref<1x8x128xf32, #tpu.memory_space<vmem>>, vector<1x8x128xf32>,
    return
  }
  func.func @transform_0(%arg0: i32) -> (i32, i32, i32) {
    %c0_i32 = arith.constant 0 : i32
    %c0_i32_0 = arith.constant 0 : i32
    %c0_i32_1 = arith.constant 0 : i32
    return %arg0, %c0_i32, %c0_i32_0 : i32, i32, i32
  }
  func.func @transform_1(%arg0: i32) -> (i32, i32, i32) {
    %c0_i32 = arith.constant 0 : i32
    %c0_i32_0 = arith.constant 0 : i32
    %c0_i32_1 = arith.constant 0 : i32
    %c0_i32_2 = arith.constant 0 : i32
    return %c0_i32, %c0_i32_0, %c0_i32_1 : i32, i32, i32
  }
  func.func @transform_2(%arg0: i32) -> (i32, i32) {
    %c0_i32 = arith.constant 0 : i32
    %c0_i32_0 = arith.constant 0 : i32
    %c0_i32_1 = arith.constant 0 : i32
    return %c0_i32, %c0_i32_0 : i32, i32
  }
  func.func @transform_3(%arg0: i32) -> (i32, i32) {
    %c0_i32 = arith.constant 0 : i32
    %c0_i32_0 = arith.constant 0 : i32
    %c0_i32_1 = arith.constant 0 : i32
    return %c0_i32, %c0_i32_0 : i32, i32
  }
  func.func @transform_4(%arg0: i32) -> (i32, i32, i32) {
    %c0_i32 = arith.constant 0 : i32
    %c0_i32_0 = arith.constant 0 : i32
    %c0_i32_1 = arith.constant 0 : i32
    return %arg0, %c0_i32, %c0_i32_0 : i32, i32, i32
  }
}

</mosaic_0001>

<bundles_post_ra>
// kernel: tpu_custom_call.1
= control target key start
LH: loop header
LB: loop body
LE: loop exit
PB: predicated region body
PF: predicated region fallthrough
CT: control target
= control target key end

     0   :  { %9 = vsyncpa [#allocation3], 0  ;;  %s830_s0 = inlined_call_operand.vmem [shape: f32[2,4,128], index: 0, kind: input, shape index: {}]   ;;  %s831_s1 = inlined_call_operand.vmem [shape: f32[3,8,4], index: 1, kind: input, shape index: {}]   ;;  %s832_s2 = inlined_call_operand.vmem [shape: f32[8,1], index: 2, kind: input, shape index: {}]   ;;  %s833_s3 = inlined_call_operand.vmem [shape: f32[8,1], index: 3, kind: input, shape index: {}]   ;;  %s834_s4 = inlined_call_operand.hbm [shape: f32[2,8,128], index: 4, kind: output, shape index: {}]  }
   0x1   :  { %11 = vsyncpa [#allocation3 + $0x1], 0  ;;  %s719_s15 = smov 0   ;;  %s721_s16 = smov 0  }
   0x2   :  { %s723_s17 = smov 0   ;;  %s725_s18 = smov 0  }
   0x3 LB: > { %s740_s19 = sadd.s32 4294967295, %s686_s18   ;;  %s538_s20 = sadd.s32 4294967294, %s686_s18   ;;  %s686_s18 = sphi %s725_s18, %s840_s18   ;;  %s682_s17 = sphi %s723_s17, %s839_s17   ;;  %s678_s16 = sphi %s721_s16, %s838_s16   ;;  %s674_s15 = sphi %s719_s15, %s837_s15  }
   0x4   : > { %s744_s21 = sadd.s32 1, %s686_s18   ;;  %s113_s22 = sadd.s32 1, %s682_s17 }
   0x5   : > { %s110_s23 = ssub.s32 %s686_s18, %s744_s21  ;;  %p123_p0 = scmp.ne.s32.totalorder %s682_s17, %s678_s16 }
   0x6   : > { %p111_p1 = scmp.eq.s32.totalorder %s110_s23, 0  ;;  %p124_p2 = scmp.eq.s32.totalorder %s740_s19, 1 }
   0x7   : > { %p129_p3 = scmp.ne.s32.totalorder %s678_s16, %s674_s15  ;;  %p130_p4 = scmp.eq.s32.totalorder %s538_s20, 1 }
   0x8   : > { %s755_s24 = scalar_select %p111_p1, %s682_s17, %s113_s22  }
   0x9   : > { %p757_p5 = por %p124_p2, %p123_p0  ;;  %p761_p6 = por %p130_p4, %p129_p3 }
   0xa   : > { %p541_p7 = scmp.ge.s32.totalorder %s686_s18, 1  ;;  %p164_p8 = scmp.lt.s32.totalorder %s686_s18, 3 }
   0xc   : > { %p165_p9 = pnand %p541_p7, %p164_p8 }
   0xd   : > { %p189_p10 = scmp.lt.s32.totalorder (!%p165_p9), %s740_s19, 1  ;;  %s691_s12 = smov (!%p165_p9), 16  }
   0xe   : > { %168 = sbr.rel (%p165_p9) target bundleno = 400 (0x190), region = 36  ;;  %s692_s13 = smov (!%p165_p9), 112  }
   0xf   : > { %s552_s29 = sshll.u32 (!%p165_p9), %s740_s19, 7  ;;  %s693_s11 = smov (!%p165_p9), [#allocation2]  }
  0x10   : > { %s477_s8 = scalar_lea.hbm (!%p165_p9), %s834_s4, %s552_s29 }
  0x13   : > { %v688_v0 = vmov 0.0   ;;  %s190_s27 = scalar_select %p189_p10, %s740_s19, 1  ;;  %vm689_vm0 = vmmov 0   ;;  %v208_v1 = vld [vmem:[%s832_s2] sm:$0xff]  ;;  %v690_v2 = vmov 0   ;;  %vm224_vm1 = vcmask 1043456  }
  0x14   : > { %561 = vmatprep.subr.mxu0 %v688_v0  ;;  %566 = vmatprep.subr.mxu1 %v688_v0  ;;  %v206_v3 = vld [vmem:[%s831_s1 + $0x8] sm:$0xff]  ;;  %vm220_vm2 = vcmask 31744   ;;  %v214_v5 = vld [vmem:[%s833_s3] sm:$0xff]  ;;  %vm198_vm3 = vcmask 130048   ;;  %vm203_vm4 = vcmask 916480   ;;  %v207_v10 = vld [vmem:[%s831_s1 + $0x10] sm:$0xff] }
  0x15   : > { %563 = vmatprep.mubr.msk.f32.mxu0 %vm689_vm0, %v688_v0  ;;  %568 = vmatprep.mubr.msk.f32.mxu1 %vm689_vm0, %v688_v0  ;;  %s543_s30 = sshll.u32 %s190_s27, 2  ;;  %v205_v7 = vld [vmem:[%s831_s1] sm:$0xff]  ;;  %s186_s27 = sand.u32 1, %s678_s16  }
  0x16   : > { %620 = vset.pattern.permute.xlu1 %v690_v2  ;;  %621 = vset.pattern.permute.xlu0 %v690_v2  ;;  %s192_s7 = scalar_lea.vmem %s830_s0, %s543_s30  ;;  %s542_s28 = sshll.u32 %s186_s27, 3 }
  0x17   : > { %211 = vperm.xlu1 %620, %v208_v1   ;;  %v193_v4 = vld [vmem:[%s192_s7] sm:$0xf]  ;;  %s188_s30 = scalar_lea.vmem [#allocation2], %s542_s28  ;;  %s466_s9 = scalar_lea.sflag [#allocation3], %s186_s27 }
  0x18   : > { %195 = vrot.lane.b32.xlu0 %v193_v4, %s691_s12  ;;  %562 = vmatpush3.msk.msra.mxu0 %vm224_vm1, %v193_v4  ;;  %s479_s5 = sshll.u32 %s188_s30, 4  ;;  %s630_s12 = sshll.u32 %s693_s11, 4  ;;  %s480_s5 = int_to_ptr.vmem [resolvable:$true] %s479_s5  ;;  %s631_s12 = int_to_ptr.vmem [resolvable:$false] %s630_s12 }
  0x19   : > { %564 = vmatmul.mubr.msk.f32.vlgmr.msra.gmra.mxu0 %vm220_vm2, %v206_v3  ;;  %571 = vmatprep.subr.mxu0 %v688_v0  ;;  %s626_s10 = scalar_lea.vmem %s480_s5, 128  ;;  %s632_s19 = scalar_lea.vmem %s631_s12, 256 }
  0x1a   : > { %573 = vmatprep.mubr.msk.f32.mxu0 %vm689_vm0, %v688_v0  ;;  %p627_p11 = scmp.ne.s32.totalorder %s480_s5, %s626_s10  ;;  %p633_p0 = scmp.lt.s32.totalorder %s480_s5, %s631_s12 }
  0x1b   : > { %217 = vperm.xlu1 %620, %v214_v5   ;;  %p634_p1 = scmp.lt.s32.totalorder %s632_s19, %s626_s10 }
  0x1c   : > { %200 = vrot.lane.b32.xlu0 %v193_v4, %s692_s13  ;;  %p628_p12 = pnand %p627_p11, %p757_p5 }
  0x1d   : > { %p635_p2 = por %p634_p1, %p633_p0 }
  0x1e   : > { %p629_p13 = pneg %p628_p12 }
  0x20   : > { %p636_p3 = pnand %p635_p2, %p629_p13 }
  0x8a   : > { %v196_v6 = vpop.permute.xlu0 %195 }
  0x8b   : > { %v199_v8 = vsel %vm198_vm3, 0.0, %v196_v6 }
  0x8c   : > { %567 = vmatpush3.msk.msra.mxu1 %vm224_vm1, %v199_v8 }
  0x8d   : > { %569 = vmatmul.mubr.msk.f32.vlgmr.msra.gmra.mxu1 %vm220_vm2, %v205_v7 }
  0x8e   : > { %v201_v9 = vpop.permute.xlu0 %200 }
  0x8f   : > { %v204_v11 = vsel %vm203_vm4, %v201_v9, 0.0 }
  0x90   : > { %572 = vmatpush3.msk.msra.mxu0 %vm224_vm1, %v204_v11 }
  0x91   : > { %574 = vmatmul.mubr.msk.f32.vlgmr.msra.gmra.mxu0 %vm220_vm2, %v207_v10 }
  0x92   : > { %v212_v28 = vpop.permute.xlu1 %211 }
  0x96   : > { %v218_v33 = vpop.permute.xlu1 %217 }
  0xd9   : > { %v293_v12 = vpop.f32.mrf.mxu0 }
  0xdb   : > { %v565_v13 = vpop.f32.mrf.mxu0 }
 0x14d   : > { %v369_v14 = vpop.f32.mrf.mxu1 }
 0x14e   : > { %v370_v16 = vadd.f32 %v369_v14, %v293_v12 }
 0x14f   : > { %v570_v15 = vpop.f32.mrf.mxu1 }
 0x151   : > { %v445_v17 = vpop.f32.mrf.mxu0 }
 0x152   : > { %v449_v18 = vadd.f32 %v445_v17, %v370_v16 }
 0x153   : > { %v575_v19 = vpop.f32.mrf.mxu0 }
 0x154   : > { %v450_v20 = vmin.f32 %v449_v18, 20.0  ;;  %vm459_vm5 = vcmp.gt.f32.partialorder %v449_v18, 20.0 }
 0x156   : > { %v451_v21 = vmul.f32 1.442695, %v450_v20 }
 0x158   : > { %622 = vpow2.f32 %v451_v21 }
 0x165   : > { %v623_v22 = vpop.eup %622 }
 0x166   : > { %v453_v23 = vadd.f32 1.0, %v623_v22 }
 0x168   : > { %v454_v24 = vmul.f32 %v453_v23, %v453_v23 }
 0x16a   : > { %v456_v25 = vadd.f32 1.0, %v454_v24  ;;  %v550_v26 = vadd.f32 -1.0, %v454_v24 }
 0x16c   : > { %624 = vrcp.f32 %v456_v25 }
 0x179   : > { %v625_v27 = vpop.eup %624 }
 0x17a   : > { %v458_v29 = vmul.f32 %v625_v27, %v550_v26 }
 0x17c   : > { %v460_v30 = vmul.f32 %v458_v29, %v449_v18 }
 0x17e   : > { %v461_v31 = vsel %vm459_vm5, %v449_v18, %v460_v30 }
 0x17f   : > { %v462_v32 = vmul.f32 %v461_v31, %v212_v28 }
 0x181   : > { %v463_v34 = vadd.f32 %v462_v32, %v218_v33 }
 0x183   : > { %464 = vst [vmem:[%s188_s30] sm:$0xff] %v463_v34 }
 0x184   : > { %639 = shalt.err (!%p636_p3)
}
 0x185   : > { %s640_s13 = scalar_lea.hbm %s477_s8, 128  ;;  %s644_s22 = scalar_lea.hbm %s834_s4, 256 }
 0x186   : > { %p641_p4 = scmp.ne.s32.totalorder %s477_s8, %s640_s13  ;;  %p645_p9 = scmp.lt.s32.totalorder %s477_s8, %s834_s4 }
 0x187   : > { %p646_p10 = scmp.lt.s32.totalorder %s644_s22, %s640_s13 }
 0x188   : > { %p642_p7 = pnand %p641_p4, %p757_p5 }
 0x189   : > { %p647_p11 = por %p646_p10, %p645_p9 }
 0x18a   : > { %p643_p8 = pneg %p642_p7 }
 0x18c   : > { %p648_p12 = pnand %p647_p11, %p643_p8 }
 0x18e   : > { %651 = shalt.err (!%p648_p12)
}
 0x18f   : > { %576 = dma.vmem_to_hbm [thread:$0]  (%p757_p5), %s480_s5, 128, %s477_s8, %s466_s9  }
 0x190 PF: > { %p582_p13 = scmp.ge.s32.totalorder %s686_s18, 2  ;;  %s491_s28 = sand.u32 1, %s674_s15  }
 0x191   : > { %s492_s29 = scalar_lea.sflag [#allocation3], %s491_s28 }
 0x192   : > { %p579_p0 = pnand %p582_p13, %p761_p6 }
 0x194   : > { %p580_p1 = pneg %p579_p0 }
 0x196   : > { %669 = dma.done.wait (%p580_p1), %s492_s29, 128  }
 0x197   : > { %671 = vsyncadd (%p580_p1), %s492_s29, 4294967168  ;;  %p14_p2 = scmp.ge.s32.totalorder %s744_s21, 4   ;;  %s837_s15 = smov %s678_s16 }
 0x198   : > { %s838_s16 = smov %s682_s17  ;;  %s839_s17 = smov %s755_s24 }
 0x199   : > { %s840_s18 = smov %s744_s21  ;;  %16 = sbr.rel (!%p14_p2) target bundleno = 3 (0x3), region = 71 }
 0x19e   :  { %497 = vsyncpa [#allocation3], 1 }
 0x19f   :  { %499 = vsyncpa [#allocation3 + $0x1], 1 }

</bundles_post_ra>
